<compile_context>
chip_gen: v5e
topology: v5e:2x2
jax: 0.10.0
libtpu: 0.0.40
codegen_flags: <defaults>
</compile_context>

<pallas_src>
import functools

import numpy as np
import jax
import jax.numpy as jnp
from jax.experimental import pallas as pl
from jax.experimental.pallas import tpu as pltpu

BN_EPS = 1e-5

_ROLL_MATCHES_JNP = True  # overwritten by _detect_roll_semantics() before tracing


def _round_up(x, m):
    return (x + m - 1) // m * m


def _vmem_spec():
    return pl.BlockSpec(memory_space=pltpu.MemorySpace.VMEM)


# ----------------------------------------------------------------------------
# pltpu.roll direction probe (one tiny eager kernel, run once before tracing)
# ----------------------------------------------------------------------------
def _roll_probe_kernel(x_ref, o_ref):
    o_ref[...] = pltpu.roll(x_ref[...], 1, axis=1)


def _detect_roll_semantics():
    global _ROLL_MATCHES_JNP
    x = jnp.tile(jnp.arange(128, dtype=jnp.float32)[None, :], (8, 1))
    y = pl.pallas_call(
        _roll_probe_kernel,
        out_shape=jax.ShapeDtypeStruct((8, 128), jnp.float32),
        in_specs=[_vmem_spec()],
        out_specs=_vmem_spec(),
    )(x)
    # jnp.roll semantics move data toward higher indices: roll(x, 1)[0, 1] == x[0, 0] == 0
    _ROLL_MATCHES_JNP = bool(float(jax.device_get(y)[0, 1]) == 0.0)


def _roll_amt(s, mdim):
    """Static shift for pltpu.roll so that result[m] = x[(m + s) % mdim]."""
    return (-s) % mdim if _ROLL_MATCHES_JNP else s % mdim


# ----------------------------------------------------------------------------
# In-kernel 3x3 stride-1 convolution helper (padded flat lane layout)
# ----------------------------------------------------------------------------
def _conv3x3_acc(x_bf, w9_ref, row_pitch, mdim):
    """x_bf: (Cin, mdim) bf16 with zeros at every pad position.
    w9_ref: (9, Cout, Cin) bf16 ref (tap-major).  Returns (Cout, mdim) f32."""
    acc = None
    t = 0
    for dh in (-1, 0, 1):
        for dw in (-1, 0, 1):
            s = dh * row_pitch + dw
            tap = x_bf if s == 0 else pltpu.roll(x_bf, _roll_amt(s, mdim), axis=1)
            p = jnp.dot(w9_ref[t], tap, preferred_element_type=jnp.float32)
            acc = p if acc is None else acc + p
            t += 1
    return acc


# ----------------------------------------------------------------------------
# Kernel builders (whole arrays in VMEM, no grid -> single step per call)
# ----------------------------------------------------------------------------
def _make_first_conv_kernel(row_pitch, mdim):
    def kernel(x_ref, mask_ref, w_ref, b_ref, o_ref):
        pre = _conv3x3_acc(x_ref[...], w_ref, row_pitch, mdim)
        y = jnp.maximum(pre + b_ref[...], 0.0) * mask_ref[...]
        o_ref[...] = y.astype(o_ref.dtype)
    return kernel


def _make_s1_block_kernel(row_pitch, mdim, with_merger):
    if with_merger:
        def kernel(x_ref, mask_ref, w1_ref, b1_ref, w2_ref, b2_ref,
                   wm_ref, bm_ref, om_ref):
            x = x_ref[...]
            mask = mask_ref[...]
            pre1 = _conv3x3_acc(x, w1_ref, row_pitch, mdim)
            h = (jnp.maximum(pre1 + b1_ref[...], 0.0) * mask).astype(jnp.bfloat16)
            pre2 = _conv3x3_acc(h, w2_ref, row_pitch, mdim)
            y = jnp.maximum(pre2 + b2_ref[...] + x.astype(jnp.float32), 0.0) * mask
            zm = jnp.dot(wm_ref[...], y.astype(jnp.bfloat16),
                         preferred_element_type=jnp.float32)
            om_ref[...] = jnp.maximum(zm + bm_ref[...], 0.0).astype(om_ref.dtype)
        return kernel

    def kernel(x_ref, mask_ref, w1_ref, b1_ref, w2_ref, b2_ref, o_ref):
        x = x_ref[...]
        mask = mask_ref[...]
        pre1 = _conv3x3_acc(x, w1_ref, row_pitch, mdim)
        h = (jnp.maximum(pre1 + b1_ref[...], 0.0) * mask).astype(jnp.bfloat16)
        pre2 = _conv3x3_acc(h, w2_ref, row_pitch, mdim)
        y = jnp.maximum(pre2 + b2_ref[...] + x.astype(jnp.float32), 0.0) * mask
        o_ref[...] = y.astype(o_ref.dtype)
    return kernel


def _make_s2_block_kernel(row_pitch, mdim):
    def kernel(p00_ref, p01_ref, p10_ref, p11_ref, mask_ref,
               w1_ref, b1_ref, w2_ref, b2_ref, wd_ref, bd_ref, o_ref):
        phases = ((p00_ref[...], p01_ref[...]), (p10_ref[...], p11_ref[...]))
        mask = mask_ref[...]
        # conv1, stride 2: taps are un-shifted / (0,1,Wh,Wh+1)-shifted phase slabs
        acc = None
        t = 0
        for dh in (-1, 0, 1):
            ph, oh = (dh + 1) % 2, (dh + 1) // 2
            for dw in (-1, 0, 1):
                pw, ow = (dw + 1) % 2, (dw + 1) // 2
                s = oh * row_pitch + ow
                src = phases[ph][pw]
                tap = src if s == 0 else pltpu.roll(src, _roll_amt(s, mdim), axis=1)
                p = jnp.dot(w1_ref[t], tap, preferred_element_type=jnp.float32)
                acc = p if acc is None else acc + p
                t += 1
        h = (jnp.maximum(acc + b1_ref[...], 0.0) * mask).astype(jnp.bfloat16)
        # conv2 (stride 1) + fused 1x1 stride-2 downsample branch + residual ReLU
        pre2 = _conv3x3_acc(h, w2_ref, row_pitch, mdim)
        idn = jnp.dot(wd_ref[...], phases[1][1], preferred_element_type=jnp.float32)
        y = jnp.maximum(pre2 + b2_ref[...] + idn + bd_ref[...], 0.0) * mask
        o_ref[...] = y.astype(o_ref.dtype)
    return kernel


def _heads_kernel(xf, zf, ycol,
                  x1w, x1b, x2w, x2b, x3w, x3b,
                  zlw, zlb, zx1w, zx1b, zx2w, zx2b,
                  zy1w, zy1b, zy2w, zy2b,
                  y1w, y1b, y2w, y2b,
                  xo, zxo, zyo, yo):
    """Entire FC tail fused: Xnet1-3, Zlayer, ZX/ZY branches, Ynet."""
    def dense_relu(h, w_ref, b_ref):
        return jnp.maximum(
            jnp.dot(h, w_ref[...], preferred_element_type=jnp.float32) + b_ref[...], 0.0)

    h = dense_relu(xf[...], x1w, x1b)
    h = dense_relu(h, x2w, x2b)
    h = dense_relu(h, x3w, x3b)
    xo[...] = h.astype(xo.dtype)

    z = dense_relu(zf[...], zlw, zlb)

    # ZY head (grad_multi is identity in forward); ZYlayer_2 is Linear(.., 1)
    zy = dense_relu(z, zy1w, zy1b)
    zyo[...] = (jnp.sum(zy * zy2w[...], axis=-1, keepdims=True) + zy2b[...]).astype(zyo.dtype)

    # ZX head (grad_reverse is identity in forward)
    zx = dense_relu(z, zx1w, zx1b)
    zx = dense_relu(zx, zx2w, zx2b)
    zxo[...] = zx.astype(zxo.dtype)

    # Ynet: LinearSeq(1,1) then Linear(1,1) -- scalar affine, elementwise
    yy = jnp.maximum(ycol[...] * y1w[...] + y1b[...], 0.0)
    yo[...] = (yy * y2w[...] + y2b[...]).astype(yo.dtype)


# ----------------------------------------------------------------------------
# Geometry / masks / host-side layout helpers
# ----------------------------------------------------------------------------
def _geom(N, H, W):
    m = N * (H + 1) * (W + 1)
    return {'N': N, 'H': H, 'W': W, 'pitch': W + 1, 'm': m, 'mp': _round_up(m, 128)}


def make_valid_mask(g):
    m = np.zeros((g['N'], g['H'] + 1, g['W'] + 1), np.float32)
    m[:, :g['H'], :g['W']] = 1.0
    flat = np.zeros((1, g['mp']), np.float32)
    flat[0, :g['m']] = m.reshape(-1)
    return jnp.asarray(flat)


def to_padded_layout(x_nchw, g):
    """(N, C, H, W) f32 -> (C, mp) bf16 slab with the zero pad row/col/tail."""
    N, C, H, W = x_nchw.shape
    xp = jnp.pad(x_nchw, ((0, 0), (0, 0), (0, 1), (0, 1)))
    t = jnp.transpose(xp, (1, 0, 2, 3)).reshape(C, g['m'])
    t = jnp.pad(t, ((0, 0), (0, g['mp'] - g['m'])))
    return t.astype(jnp.bfloat16)


# ----------------------------------------------------------------------------
# pallas_call wrappers
# ----------------------------------------------------------------------------
def first_conv(x, mask, p, g):
    cout = p['w9'].shape[1]
    mdim = x.shape[1]
    return pl.pallas_call(
        _make_first_conv_kernel(g['pitch'], mdim),
        out_shape=jax.ShapeDtypeStruct((cout, mdim), jnp.bfloat16),
        in_specs=[_vmem_spec()] * 4,
        out_specs=_vmem_spec(),
    )(x, mask, p['w9'], p['shift'])


def s1_block(x, mask, p, g, merger=None):
    """BasicBlock, stride 1 (residual = input).  Optionally fuses the 1x1 merger."""
    cout = p['conv1']['w9'].shape[1]
    mdim = x.shape[1]
    kern = _make_s1_block_kernel(g['pitch'], mdim, merger is not None)
    if merger is None:
        return pl.pallas_call(
            kern,
            out_shape=jax.ShapeDtypeStruct((cout, mdim), jnp.bfloat16),
            in_specs=[_vmem_spec()] * 6,
            out_specs=_vmem_spec(),
        )(x, mask, p['conv1']['w9'], p['conv1']['shift'],
          p['conv2']['w9'], p['conv2']['shift'])
    cm = merger['w'].shape[0]
    return pl.pallas_call(
        kern,
        out_shape=jax.ShapeDtypeStruct((cm, mdim), jnp.float32),
        in_specs=[_vmem_spec()] * 8,
        out_specs=_vmem_spec(),
    )(x, mask, p['conv1']['w9'], p['conv1']['shift'],
      p['conv2']['w9'], p['conv2']['shift'], merger['w'], merger['shift'])


def s2_block(x, p, g_in, g_out, mask_out):
    """BasicBlock, stride 2, with fused 1x1 downsample.  Host does 4-phase
    space-to-depth of the (already zero-padded) input slab."""
    cin = x.shape[0]
    N, H, W = g_in['N'], g_in['H'], g_in['W']
    t = x[:, :g_in['m']].reshape(cin, N, H + 1, W + 1)
    tp = jnp.pad(t, ((0, 0), (0, 0), (1, 0), (1, 0)))          # (cin, N, H+2, W+2)
    Hh, Wh = (H + 2) // 2, (W + 2) // 2                         # == Ho+1, Wo+1
    phases = []
    for a in (0, 1):
        for b in (0, 1):
            q = tp[:, :, a::2, b::2].reshape(cin, N * Hh * Wh)
            phases.append(jnp.pad(q, ((0, 0), (0, g_out['mp'] - N * Hh * Wh))))
    cout = p['conv1']['w9'].shape[1]
    return pl.pallas_call(
        _make_s2_block_kernel(g_out['pitch'], g_out['mp']),
        out_shape=jax.ShapeDtypeStruct((cout, g_out['mp']), jnp.bfloat16),
        in_specs=[_vmem_spec()] * 11,
        out_specs=_vmem_spec(),
    )(*phases, mask_out,
      p['conv1']['w9'], p['conv1']['shift'],
      p['conv2']['w9'], p['conv2']['shift'],
      p['down']['w'], p['down']['shift'])


def heads_forward(params, x_flat, z_flat, y_col):
    """All FC layers in one fused Pallas call."""
    xp = params['xnet']
    w_args = []
    for layer in (xp['xnet1'], xp['xnet2'], xp['xnet3'],
                  params['zlayer'], params['zx1'], params['zx2'], params['zy1'],
                  params['zy2'], params['ynet1'], params['ynet2']):
        w_args += [layer['w'], layer['b']]

    N = x_flat.shape[0]
    x_units = xp['xnet3']['w'].shape[1]
    zx_units = params['zx2']['w'].shape[1]
    return pl.pallas_call(
        _heads_kernel,
        out_shape=(jax.ShapeDtypeStruct((N, x_units), jnp.float32),
                   jax.ShapeDtypeStruct((N, zx_units), jnp.float32),
                   jax.ShapeDtypeStruct((N, 1), jnp.float32),
                   jax.ShapeDtypeStruct((N, 1), jnp.float32)),
        in_specs=[_vmem_spec()] * (3 + len(w_args)),
        out_specs=(_vmem_spec(), _vmem_spec(), _vmem_spec(), _vmem_spec()),
    )(x_flat, z_flat, y_col, *w_args)


# ----------------------------------------------------------------------------
# Parameter construction (deterministic, BN folded in eval mode)
# ----------------------------------------------------------------------------
def _xavier_uniform(key, shape, fan_in, fan_out):
    limit = (6.0 / (fan_in + fan_out)) ** 0.5
    return jax.random.uniform(key, shape, jnp.float32, -limit, limit)


def _bn_fold(key, c):
    k1, k2, k3, k4 = jax.random.split(key, 4)
    gamma = 1.0 + 0.1 * jax.random.normal(k1, (c,), jnp.float32)
    beta = 0.1 * jax.random.normal(k2, (c,), jnp.float32)
    mean = 0.1 * jax.random.normal(k3, (c,), jnp.float32)
    var = 1.0 + 0.1 * jnp.abs(jax.random.normal(k4, (c,), jnp.float32))
    scale = gamma / jnp.sqrt(var + BN_EPS)
    shift = beta - mean * scale
    return scale, shift


def make_conv3x3_bn(key, cin, cout):
    """Conv3x3(bias=False) + BatchNorm2d, BN scale folded; tap-major (9, cout, cin)."""
    k1, k2 = jax.random.split(key)
    w = _xavier_uniform(k1, (3, 3, cin, cout), 9 * cin, 9 * cout)
    scale, shift = _bn_fold(k2, cout)
    w9 = jnp.transpose(w.reshape(9, cin, cout) * scale[None, None, :], (0, 2, 1))
    return {'w9': w9.astype(jnp.bfloat16),
            'shift': shift.reshape(cout, 1).astype(jnp.float32)}


def make_conv1x1_bn(key, cin, cout):
    k1, k2 = jax.random.split(key)
    w = _xavier_uniform(k1, (cin, cout), cin, cout)
    scale, shift = _bn_fold(k2, cout)
    return {'w': (w * scale[None, :]).T.astype(jnp.bfloat16),
            'shift': shift.reshape(cout, 1).astype(jnp.float32)}


def make_linear_seq(key, din, dout):
    """LinearSeq = Linear + BatchNorm1d + ReLU, BN folded into weight/bias."""
    k1, k2, k3 = jax.random.split(key, 3)
    bound = 1.0 / (din ** 0.5)
    w = jax.random.uniform(k1, (din, dout), jnp.float32, -bound, bound)
    b = jax.random.uniform(k2, (dout,), jnp.float32, -bound, bound)
    scale, shift = _bn_fold(k3, dout)
    return {'w': w * scale[None, :], 'b': (b * scale + shift).reshape(1, dout)}


def make_linear_to_scalar(key, din):
    k1, k2 = jax.random.split(key)
    bound = 1.0 / (din ** 0.5)
    return {'w': jax.random.uniform(k1, (1, din), jnp.float32, -bound, bound),
            'b': jax.random.uniform(k2, (1, 1), jnp.float32, -bound, bound)}


def make_basic_block(key, cin, cout, stride):
    keys = jax.random.split(key, 3)
    p = {'conv1': make_conv3x3_bn(keys[0], cin, cout),
         'conv2': make_conv3x3_bn(keys[1], cout, cout)}
    if stride != 1 or cin != cout:
        p['down'] = make_conv1x1_bn(keys[2], cin, cout)
    return p


def make_xencoder(key, in_channel, mi_units, compress):
    keys = jax.random.split(key, 13)
    flat_units = (56 // 8) * (56 // 8) * compress   # get_flattened_units probes 56x56 -> 7x7
    return {
        'conv1': make_conv3x3_bn(keys[0], in_channel, 8),
        'layer1': [make_basic_block(keys[1], 8, 8, 1),   make_basic_block(keys[2], 8, 8, 1)],
        'layer2': [make_basic_block(keys[3], 8, 16, 2),  make_basic_block(keys[4], 16, 16, 1)],
        'layer3': [make_basic_block(keys[5], 16, 32, 2), make_basic_block(keys[6], 32, 32, 1)],
        'layer4': [make_basic_block(keys[7], 32, 64, 2), make_basic_block(keys[8], 64, 64, 1)],
        'merger': make_conv1x1_bn(keys[9], 64, compress),   # channel_merger + out_bn
        'xnet1': make_linear_seq(keys[10], flat_units, mi_units),
        'xnet2': make_linear_seq(keys[11], mi_units, mi_units),
        'xnet3': make_linear_seq(keys[12], mi_units, mi_units),
    }


def make_mi_encoder_params(key, h, w, in_channel, mi_units, x_units, compress):
    keys = jax.random.split(key, 8)
    return {
        'xnet': make_xencoder(keys[0], in_channel, x_units, compress),
        'zlayer': make_linear_seq(keys[1], h * w, mi_units),
        'zx1': make_linear_seq(keys[2], mi_units, mi_units),
        'zx2': make_linear_seq(keys[3], mi_units, x_units),
        'zy1': make_linear_seq(keys[4], mi_units, mi_units // 8),
        'zy2': make_linear_to_scalar(keys[5], mi_units // 8),
        'ynet1': make_linear_seq(keys[6], 1, 1),
        'ynet2': make_linear_to_scalar(keys[7], 1),
    }


# ----------------------------------------------------------------------------
# Forward passes
# ----------------------------------------------------------------------------
def xencoder_forward(x_nchw, p, geoms, masks):
    g56, g28, g14, g7 = geoms
    N = x_nchw.shape[0]
    x = to_padded_layout(x_nchw, g56)

    x = first_conv(x, masks[0], p['conv1'], g56)            # conv1 + bn1 + relu
    x = s1_block(x, masks[0], p['layer1'][0], g56)
    x = s1_block(x, masks[0], p['layer1'][1], g56)
    x = s2_block(x, p['layer2'][0], g56, g28, masks[1])
    x = s1_block(x, masks[1], p['layer2'][1], g28)
    x = s2_block(x, p['layer3'][0], g28, g14, masks[2])
    x = s1_block(x, masks[2], p['layer3'][1], g14)
    x = s2_block(x, p['layer4'][0], g14, g7, masks[3])
    xm = s1_block(x, masks[3], p['layer4'][1], g7, merger=p['merger'])  # (compress, mp)

    # torch.flatten(x, 1) flattens NCHW in (C, H, W) order per sample
    compress = xm.shape[0]
    Hs = g7['H'] + 1
    feat = xm[:, :g7['m']].reshape(compress, N, Hs, Hs)[:, :, :g7['H'], :g7['W']]
    return jnp.transpose(feat, (1, 0, 2, 3)).reshape(N, compress * g7['H'] * g7['W'])


def mi_encoder_forward(params, geoms, masks, x_nchw, z_nchw, y):
    x_flat = xencoder_forward(x_nchw, params['xnet'], geoms, masks)   # (N, 49*compress)
    N = z_nchw.shape[0]
    z_flat = z_nchw.reshape(N, -1)
    y_col = y.reshape(N, 1)
    # grad_multi / grad_reverse (GRL, GradientMultiplier) are identity in forward
    return heads_forward(params, x_flat, z_flat, y_col)


# ----------------------------------------------------------------------------
if __name__ == "__main__":
    key = jax.random.PRNGKey(0)
    N_batch = 2
    in_channel = 2
    IMG = 56          # XEncoder's flatten dim is hard-wired to a 56x56 probe (-> 7x7 map)
    zH = zW = 16      # MIEncoder(h=16, w=16)
    mi_units = 64
    x_units = 32
    compress = 1

    _detect_roll_semantics()   # one tiny eager kernel; fixes pltpu.roll orientation

    geoms = [_geom(N_batch, 56, 56), _geom(N_batch, 28, 28),
             _geom(N_batch, 14, 14), _geom(N_batch, 7, 7)]
    masks = [make_valid_mask(g) for g in geoms]

    kparam, kx, kz, ky = jax.random.split(key, 4)
    params = make_mi_encoder_params(kparam, zH, zW, in_channel,
                                    mi_units, x_units, compress)

    x = jax.random.normal(kx, (N_batch, in_channel, IMG, IMG), jnp.float32)
    z = jax.random.normal(kz, (N_batch, 1, zH, zW), jnp.float32)
    y = jax.random.normal(ky, (N_batch,), jnp.float32)

    fwd = jax.jit(functools.partial(mi_encoder_forward, params, geoms, masks))
    x_enc, zx, zy, y_out = fwd(x, z, y)
    jax.block_until_ready((x_enc, zx, zy, y_out))

    assert x_enc.shape == (N_batch, x_units)
    assert zx.shape == (N_batch, x_units)
    assert zy.shape == (N_batch, 1)
    assert y_out.shape == (N_batch, 1)
    assert all(bool(jnp.all(jnp.isfinite(t))) for t in (x_enc, zx, zy, y_out))

    print("KERNEL_OK")
</pallas_src>

<mosaic_0001>
module attributes {stable_mosaic.version = 11 : i64} {
  func.func @_roll_probe_kernel(%arg0: memref<8x128xf32, #tpu.memory_space<vmem>>, %arg1: memref<8x128xf32, #tpu.memory_space<vmem>>) attributes {dimension_semantics = [], scalar_prefetch = 0 : i64, scratch_operands = 0 : i64, tpu.core_type = #tpu.core_type<tc>} {
    %c0 = arith.constant 0 : index
    %c0_0 = arith.constant 0 : index
    %0 = vector.load %arg0[%c0, %c0_0] : memref<8x128xf32, #tpu.memory_space<vmem>>, vector<8x128xf32>
    %c1_i32 = arith.constant 1 : i32
    %1 = tpu.dynamic_rotate %0 by %c1_i32 dim 1 : vector<8x128xf32>, i32 -> vector<8x128xf32>
    %c0_1 = arith.constant 0 : index
    %c0_2 = arith.constant 0 : index
    %2 = vector.load %arg1[%c0_1, %c0_2] : memref<8x128xf32, #tpu.memory_space<vmem>>, vector<8x128xf32>
    tpu.vector_store %arg1[%c0_1, %c0_2], %1 {strides = array<i32>} : memref<8x128xf32, #tpu.memory_space<vmem>>, vector<8x128xf32>,
    return
  }
}

</mosaic_0001>

<bundles_post_ra>
// kernel: tpu_custom_call.1
= control target key start
LH: loop header
LB: loop body
LE: loop exit
PB: predicated region body
PF: predicated region fallthrough
CT: control target
= control target key end

     0   :  { %6 = vsyncpa [#allocation3], 0  ;;  %s118_s0 = inlined_call_operand.hbm [shape: f32[8,128], index: 0, kind: input, shape index: {}]   ;;  %s119_s1 = inlined_call_operand.hbm [shape: f32[8,128], index: 1, kind: output, shape index: {}]  }
   0x1   :  { %7 = vsyncpa [#allocation4], 0  ;;  %s13_s8 = sshll.u32 %s118_s0, 4  ;;  %s99_s9 = smov [#allocation2]   ;;  %s14_s8 = int_to_ptr.hbm [resolvable:$true] %s13_s8 }
   0x2   :  { %s15_s10 = sshll.u32 %s99_s9, 4  ;;  %s16_s10 = int_to_ptr.vmem [resolvable:$true] %s15_s10 }
   0x3   :  { %18 = dma.hbm_to_vmem [thread:$0]  %s14_s8, 128, %s16_s10, [#allocation3]  }
   0x4   :  { %95 = dma.done.wait [#allocation3], 128  }
   0x5   :  { %96 = vsyncadd [#allocation3], 4294967168  ;;  %v23_v0 = vld [vmem:[#allocation2] sm:$0xff]  ;;  %s100_s11 = smov 1   ;;  %s101_s12 = smov [#allocation5]  }
   0x6   :  { %24 = vrot.lane.b32.xlu0 %v23_v0, %s100_s11  ;;  %s32_s13 = sshll.u32 %s101_s12, 4  ;;  %s34_s16 = sshll.u32 %s119_s1, 4  ;;  %s33_s13 = int_to_ptr.vmem [resolvable:$true] %s32_s13  ;;  %s35_s16 = int_to_ptr.hbm [resolvable:$true] %s34_s16 }
  0x78   :  { %v25_v1 = vpop.permute.xlu0 %24 }
  0x79   :  { %26 = vst [vmem:[#allocation5] sm:$0xff] %v25_v1 }
  0x7a   :  { %37 = dma.vmem_to_hbm [thread:$0]  %s33_s13, 128, %s35_s16, [#allocation4]  }
  0x7b   :  { %97 = dma.done.wait [#allocation4], 128  }
  0x7c   :  { %98 = vsyncadd [#allocation4], 4294967168 }
  0x7d   :  { %42 = vsyncpa [#allocation3], 1 }
  0x7e   :  { %43 = vsyncpa [#allocation4], 1 }

</bundles_post_ra>
